<compile_context>
chip_gen: v6e
topology: v6e:2x2x1
jax: 0.10.0
libtpu: 0.0.40
codegen_flags: <defaults>
</compile_context>

<pallas_src>
import math
from functools import partial

import jax
import jax.numpy as jnp
from jax import lax
from jax.experimental import pallas as pl
from jax.experimental.pallas import tpu as pltpu

F32 = jnp.float32
BF16 = jnp.bfloat16
LN_EPS = 1e-5
NEG_INF = -1e30          # additive mask constant (finite, f32-safe)

TILE_ROWS = 512          # token-row tiles for the dense matmuls
TILE_ROWS_LM = 256       # token-row tiles for the LM-head / CE kernel
TILE_VOCAB = 512         # vocab tiles for the fused LM-head / CE kernel
TILE_SEQ = 512           # q tiles for attention (kv tile = full sequence)
VMEM_LIMIT = 48 * 1024 * 1024   # explicit scoped-VMEM limit (v5e default 16MiB,
                                # v7x physical 64MiB -> 48MiB leaves headroom)


def _tile(dim, target):
    """`target` if it divides `dim`, else the full dim (always (8,128)-legal)."""
    if dim <= target or dim % target != 0:
        return dim
    return target


def _round_up(x, m):
    return (x + m - 1) // m * m


# --------------- fused LayerNorm + resident-weight matmul (+GELU) ------------

def _ln_matmul_kernel(eps, act, x_ref, g_ref, b_ref, w_ref, wb_ref, o_ref):
    x = x_ref[...].astype(F32)
    mu = jnp.mean(x, axis=-1, keepdims=True)
    var = jnp.mean(jnp.square(x - mu), axis=-1, keepdims=True)
    xn = (x - mu) * lax.rsqrt(var + eps)
    xn = xn * g_ref[...].astype(F32) + b_ref[...].astype(F32)
    h = jnp.dot(xn.astype(w_ref.dtype), w_ref[...],
                preferred_element_type=F32)
    h = h + wb_ref[...].astype(F32)
    if act == "gelu":
        # TODO(synk): PyTorch nn.GELU default is exact erf; tanh approximation
        # is used here (no erf primitive guaranteed in the Mosaic lowering).
        h = 0.5 * h * (1.0 + jnp.tanh(0.7978845608028654
                                      * (h + 0.044715 * h * h * h)))
    o_ref[...] = h.astype(o_ref.dtype)


def ln_matmul(x, g, b, w, wb, *, act=None, eps=LN_EPS):
    """LayerNorm(x) @ w + wb, optionally followed by GELU.

    Weight (D, N) is kept fully resident (constant index_map); only token rows
    are tiled.
    """
    T, D = x.shape
    N = w.shape[1]
    tm = _tile(T, TILE_ROWS)
    grid = (T // tm,)
    return pl.pallas_call(
        partial(_ln_matmul_kernel, eps, act),
        out_shape=jax.ShapeDtypeStruct((T, N), x.dtype),
        grid=grid,
        in_specs=[pl.BlockSpec((tm, D), lambda i: (i, 0)),
                  pl.BlockSpec((1, D), lambda i: (0, 0)),
                  pl.BlockSpec((1, D), lambda i: (0, 0)),
                  pl.BlockSpec((D, N), lambda i: (0, 0)),
                  pl.BlockSpec((1, N), lambda i: (0, 0))],
        out_specs=pl.BlockSpec((tm, N), lambda i: (i, 0)),
        compiler_params=pltpu.CompilerParams(
            dimension_semantics=("parallel",),
            vmem_limit_bytes=VMEM_LIMIT),
    )(x, g.reshape(1, D), b.reshape(1, D), w, wb.reshape(1, N))


# ------------- resident-weight matmul with fused bias + residual -------------

def _linear_residual_kernel(x_ref, w_ref, b_ref, r_ref, o_ref):
    h = jnp.dot(x_ref[...], w_ref[...], preferred_element_type=F32)
    o_ref[...] = (h + b_ref[...].astype(F32)
                  + r_ref[...].astype(F32)).astype(o_ref.dtype)


def linear_residual(x, w, b, res):
    M, K = x.shape
    N = w.shape[1]
    tm = _tile(M, TILE_ROWS)
    grid = (M // tm,)
    return pl.pallas_call(
        _linear_residual_kernel,
        out_shape=jax.ShapeDtypeStruct((M, N), x.dtype),
        grid=grid,
        in_specs=[pl.BlockSpec((tm, K), lambda i: (i, 0)),
                  pl.BlockSpec((K, N), lambda i: (0, 0)),
                  pl.BlockSpec((1, N), lambda i: (0, 0)),
                  pl.BlockSpec((tm, N), lambda i: (i, 0))],
        out_specs=pl.BlockSpec((tm, N), lambda i: (i, 0)),
        compiler_params=pltpu.CompilerParams(
            dimension_semantics=("parallel",),
            vmem_limit_bytes=VMEM_LIMIT),
    )(x, w, b.reshape(1, N), res)


# ------------------- attention: per-(batch, head), full-S KV ------------------

def _attn_kernel(scale, q_ref, k_ref, v_ref, bias_ref, o_ref):
    # q_ref: (tq, Dh)   k_ref/v_ref: (S, Dh)   bias_ref: (1, S)
    tq, _ = q_ref.shape
    S = k_ref.shape[0]
    qi = pl.program_id(2)
    s = lax.dot_general(q_ref[...], k_ref[...], (((1,), (1,)), ((), ())),
                        preferred_element_type=F32) * scale
    q_pos = qi * tq + lax.broadcasted_iota(jnp.int32, (tq, S), 0)
    k_pos = lax.broadcasted_iota(jnp.int32, (tq, S), 1)
    s = jnp.where(k_pos <= q_pos, s, NEG_INF)          # causal
    s = s + bias_ref[...].astype(F32)                  # key padding (broadcast)
    m = jnp.max(s, axis=-1, keepdims=True)
    p = jnp.exp(s - m)
    l = jnp.sum(p, axis=-1, keepdims=True)
    o = jnp.dot(p.astype(v_ref.dtype), v_ref[...], preferred_element_type=F32)
    o_ref[...] = (o / l).astype(o_ref.dtype)           # exact softmax division


def flash_attention(q, k, v, att_bias, scale):
    """q/k/v: [B, H, S, Dh]; att_bias: [B, 1, 1, S] additive key-padding bias."""
    B, H, S, Dh = q.shape
    tq = _tile(S, TILE_SEQ)
    nq = S // tq
    grid = (B, H, nq)
    q_spec = pl.BlockSpec((None, None, tq, Dh), lambda b, h, i: (b, h, i, 0))
    kv_spec = pl.BlockSpec((None, None, S, Dh), lambda b, h, i: (b, h, 0, 0))
    bias_spec = pl.BlockSpec((None, None, 1, S), lambda b, h, i: (b, 0, 0, 0))
    return pl.pallas_call(
        partial(_attn_kernel, scale),
        out_shape=jax.ShapeDtypeStruct(q.shape, q.dtype),
        grid=grid,
        in_specs=[q_spec, kv_spec, kv_spec, bias_spec],
        out_specs=q_spec,
        compiler_params=pltpu.CompilerParams(
            dimension_semantics=("parallel", "parallel", "parallel"),
            vmem_limit_bytes=VMEM_LIMIT),
    )(q, k, v, att_bias)


# -------- fused final LayerNorm + tied LM head + masked cross entropy --------

def _lmhead_ce_kernel(eps, v_true, with_logits, x_ref, g_ref, b_ref, w_ref,
                      lab_ref, wt_ref, *refs):
    if with_logits:
        nll_ref, logits_ref, xn_sc, m_sc, l_sc, gold_sc = refs
    else:
        nll_ref, xn_sc, m_sc, l_sc, gold_sc = refs
        logits_ref = None
    j = pl.program_id(1)

    @pl.when(j == 0)
    def _():
        # LayerNorm computed once per row tile, reused across all vocab tiles.
        x = x_ref[...].astype(F32)
        mu = jnp.mean(x, axis=-1, keepdims=True)
        var = jnp.mean(jnp.square(x - mu), axis=-1, keepdims=True)
        xn = (x - mu) * lax.rsqrt(var + eps)
        xn = xn * g_ref[...].astype(F32) + b_ref[...].astype(F32)
        xn_sc[...] = xn.astype(xn_sc.dtype)
        m_sc[...] = jnp.full_like(m_sc, NEG_INF)
        l_sc[...] = jnp.zeros_like(l_sc)
        gold_sc[...] = jnp.zeros_like(gold_sc)

    # tied LM head: contract over D against un-transposed wte rows [tv, D]
    s = lax.dot_general(xn_sc[...], w_ref[...], (((1,), (1,)), ((), ())),
                        preferred_element_type=F32)          # (tm, tv) f32
    tv = s.shape[1]
    vidx = j * tv + lax.broadcasted_iota(jnp.int32, s.shape, 1)
    s = jnp.where(vidx < v_true, s, NEG_INF)                 # mask padded vocab

    if with_logits:
        logits_ref[...] = s.astype(logits_ref.dtype)

    labels = lab_ref[...]                                    # (tm, 1) int32
    onehot = (vidx == labels).astype(F32)
    gold_sc[...] += jnp.sum(s * onehot, axis=-1, keepdims=True)

    m_prev = m_sc[...]
    m_new = jnp.maximum(m_prev, jnp.max(s, axis=-1, keepdims=True))
    l_sc[...] = (jnp.exp(m_prev - m_new) * l_sc[...]
                 + jnp.sum(jnp.exp(s - m_new), axis=-1, keepdims=True))
    m_sc[...] = m_new

    @pl.when(j == pl.num_programs(1) - 1)
    def _():
        lse = m_sc[...] + jnp.log(l_sc[...])
        nll_ref[...] = ((lse - gold_sc[...])
                        * wt_ref[...].astype(F32)).astype(nll_ref.dtype)


def lmhead_ce(x, g, b, wte_pad, vocab_size, labels, weights, *, output_logits,
              eps=LN_EPS):
    T, D = x.shape
    Vp = wte_pad.shape[0]
    tm = _tile(T, TILE_ROWS_LM)
    tv = _tile(Vp, TILE_VOCAB)
    grid = (T // tm, Vp // tv)
    in_specs = [pl.BlockSpec((tm, D), lambda i, j: (i, 0)),
                pl.BlockSpec((1, D), lambda i, j: (0, 0)),
                pl.BlockSpec((1, D), lambda i, j: (0, 0)),
                pl.BlockSpec((tv, D), lambda i, j: (j, 0)),
                pl.BlockSpec((tm, 1), lambda i, j: (i, 0)),
                pl.BlockSpec((tm, 1), lambda i, j: (i, 0))]
    out_shapes = [jax.ShapeDtypeStruct((T, 1), F32)]
    out_specs = [pl.BlockSpec((tm, 1), lambda i, j: (i, 0))]
    if output_logits:
        out_shapes.append(jax.ShapeDtypeStruct((T, Vp), F32))
        out_specs.append(pl.BlockSpec((tm, tv), lambda i, j: (i, j)))
    return pl.pallas_call(
        partial(_lmhead_ce_kernel, eps, vocab_size, output_logits),
        out_shape=tuple(out_shapes),
        grid=grid,
        in_specs=in_specs,
        out_specs=tuple(out_specs),
        scratch_shapes=[pltpu.VMEM((tm, D), BF16),   # hoisted LN output
                        pltpu.VMEM((tm, 1), F32),    # running max
                        pltpu.VMEM((tm, 1), F32),    # running sum-exp
                        pltpu.VMEM((tm, 1), F32)],   # gold logit
        compiler_params=pltpu.CompilerParams(
            dimension_semantics=("parallel", "arbitrary"),
            vmem_limit_bytes=VMEM_LIMIT),
    )(x, g.reshape(1, D), b.reshape(1, D), wte_pad, labels, weights)


# ----------------------------- model glue ------------------------------------

def init_params(key, *, vocab, max_pos, hidden, heads, layers, ffn_size,
                init_range=0.02):
    del heads
    keys = jax.random.split(key, 2 + 6 * layers)
    ki = iter(keys)

    def nrm(shape):
        return (init_range * jax.random.normal(next(ki), shape,
                                               dtype=F32)).astype(BF16)

    vocab_pad = _round_up(vocab, 128)
    wte = nrm((vocab, hidden))
    wte = jnp.pad(wte, ((0, vocab_pad - vocab), (0, 0)))     # padded, tied head

    params = {
        'vocab_size': vocab,
        'wte': wte,                              # (vocab_pad, hidden) bf16
        'wpe': nrm((max_pos, hidden)),
        'lnf_g': jnp.ones((hidden,), F32),
        'lnf_b': jnp.zeros((hidden,), F32),
        'layers': [],
    }
    for _ in range(layers):
        params['layers'].append({
            'ln1_g': jnp.ones((hidden,), F32),
            'ln1_b': jnp.zeros((hidden,), F32),
            'w_qkv': nrm((hidden, 3 * hidden)),              # fused QKV weight
            'b_qkv': jnp.zeros((3 * hidden,), F32),
            'w_o': nrm((hidden, hidden)), 'b_o': jnp.zeros((hidden,), F32),
            'ln2_g': jnp.ones((hidden,), F32),
            'ln2_b': jnp.zeros((hidden,), F32),
            'w_ff1': nrm((hidden, ffn_size)),
            'b_ff1': jnp.zeros((ffn_size,), F32),
            'w_ff2': nrm((ffn_size, hidden)),
            'b_ff2': jnp.zeros((hidden,), F32),
        })
    return params


def gpt2_forward(params, data, *, num_heads, embeddings_scale=1.0,
                 output_logits=False):
    """Mirrors Gpt2Model.forward: returns loss, or (loss, lm_logits)."""
    input_ids = data['input_ids']
    attention_mask = data['attention_mask']
    labels = data['labels']
    assert input_ids.dtype == jnp.int32
    assert attention_mask.dtype == jnp.int32
    assert labels.dtype == jnp.int32
    # TODO(synk): optional attention_span / position_ids inputs not supported.

    B, S = input_ids.shape
    V = params['vocab_size']
    D = params['wte'].shape[1]
    H = num_heads
    Dh = D // H
    T = B * S

    # Embedding gathers kept in plain JAX glue; dropout is a no-op in eval.
    x = jnp.take(params['wte'], input_ids, axis=0) * jnp.asarray(
        embeddings_scale, BF16)
    pos_ids = jnp.arange(S, dtype=jnp.int32)
    x = x + jnp.take(params['wpe'], pos_ids, axis=0)[None, :, :]
    x = x.reshape(T, D).astype(BF16)

    # Additive key-padding bias: 0 for valid keys, -1e9 for padded keys.
    att_bias = ((attention_mask.astype(F32) - 1.0) * 1e9).reshape(B, 1, 1, S)
    scale = 1.0 / math.sqrt(Dh)

    for layer in params['layers']:
        # Pre-LN self-attention block: LN fused into one (D, 3D) QKV matmul.
        qkv = ln_matmul(x, layer['ln1_g'], layer['ln1_b'],
                        layer['w_qkv'], layer['b_qkv'])
        qkv = qkv.reshape(B, S, 3, H, Dh).transpose(2, 0, 3, 1, 4)  # (3,B,H,S,Dh)
        ao = flash_attention(qkv[0], qkv[1], qkv[2], att_bias, scale)
        ao = ao.transpose(0, 2, 1, 3).reshape(T, D)
        # Output projection with fused bias + residual add.
        x = linear_residual(ao, layer['w_o'], layer['b_o'], x)
        # Pre-LN FFN block (LN + GELU fused; second matmul fuses residual).
        h = ln_matmul(x, layer['ln2_g'], layer['ln2_b'],
                      layer['w_ff1'], layer['b_ff1'], act="gelu")
        x = linear_residual(h, layer['w_ff2'], layer['b_ff2'], x)

    # Final LN + tied LM head + masked CE, fused; logits only written on demand.
    outs = lmhead_ce(x, params['lnf_g'], params['lnf_b'], params['wte'], V,
                     labels.reshape(T, 1),
                     attention_mask.reshape(T, 1).astype(F32),
                     output_logits=output_logits)
    nll = outs[0]
    den = jnp.sum(attention_mask.astype(F32))
    # loss_scaling='num_tokens', loss_weight=1.0; guard fully-masked batches.
    loss = jnp.where(den > 0, jnp.sum(nll) / den, jnp.array(0.0, F32))

    # TODO(synk): eval metrics (PerplexityMetric / AccuracyMetric) are stateful
    # torch metric objects with no Pallas equivalent; not reproduced here.
    if output_logits:
        return loss, outs[1][:, :V].reshape(B, S, V)
    return loss


# ----------------------------- main ------------------------------------------

if __name__ == "__main__":
    VOCAB, MAX_POS, HIDDEN, HEADS, LAYERS, FFN = 64, 32, 32, 4, 2, 128
    B, S = 2, 8

    root = jax.random.PRNGKey(0)
    k_param, k_ids, k_lab = jax.random.split(root, 3)

    params = init_params(k_param, vocab=VOCAB, max_pos=MAX_POS, hidden=HIDDEN,
                         heads=HEADS, layers=LAYERS, ffn_size=FFN)

    data = {
        'input_ids': jax.random.randint(k_ids, (B, S), 0, VOCAB, dtype=jnp.int32),
        'attention_mask': jnp.ones((B, S), dtype=jnp.int32),
        'labels': jax.random.randint(k_lab, (B, S), 0, VOCAB, dtype=jnp.int32),
    }

    # Default path (matches torch forward default): loss only, logits never
    # materialized in HBM.
    loss = gpt2_forward(params, data, num_heads=HEADS)
    # output_logits=True path also returns the [B, S, V] logits.
    loss2, lm_logits = gpt2_forward(params, data, num_heads=HEADS,
                                    output_logits=True)
    jax.block_until_ready((loss, loss2, lm_logits))

    assert lm_logits.shape == (B, S, VOCAB)
    assert loss.shape == () and bool(jnp.isfinite(loss))
    assert bool(jnp.allclose(loss, loss2, rtol=1e-5, atol=1e-5))
    print("KERNEL_OK")
</pallas_src>

<mosaic_0001>
module attributes {stable_mosaic.version = 11 : i64} {
  func.func @_ln_matmul_kernel(%arg0: i32, %arg1: memref<16x32xbf16, #tpu.memory_space<vmem>>, %arg2: memref<1x32xf32, #tpu.memory_space<vmem>>, %arg3: memref<1x32xf32, #tpu.memory_space<vmem>>, %arg4: memref<32x96xbf16, #tpu.memory_space<vmem>>, %arg5: memref<1x96xf32, #tpu.memory_space<vmem>>, %arg6: memref<16x96xbf16, #tpu.memory_space<vmem>>) attributes {dimension_semantics = [#tpu.dimension_semantics<parallel>], iteration_bounds = array<i64: 1>, scalar_prefetch = 0 : i64, scratch_operands = 0 : i64, tpu.core_type = #tpu.core_type<tc>, window_params = [{transform_indices = @transform_0, window_bounds = array<i64: 16, 32>}, {pipeline_mode = #tpu.pipeline_mode<synchronous>, transform_indices = @transform_1, window_bounds = array<i64: 1, 32>}, {pipeline_mode = #tpu.pipeline_mode<synchronous>, transform_indices = @transform_2, window_bounds = array<i64: 1, 32>}, {pipeline_mode = #tpu.pipeline_mode<synchronous>, transform_indices = @transform_3, window_bounds = array<i64: 32, 96>}, {pipeline_mode = #tpu.pipeline_mode<synchronous>, transform_indices = @transform_4, window_bounds = array<i64: 1, 96>}, {transform_indices = @transform_5, window_bounds = array<i64: 16, 96>}]} {
    %c0 = arith.constant 0 : index
    %c0_0 = arith.constant 0 : index
    %0 = vector.load %arg1[%c0, %c0_0] : memref<16x32xbf16, #tpu.memory_space<vmem>>, vector<16x32xbf16>
    %1 = arith.extf %0 : vector<16x32xbf16> to vector<16x32xf32>
    %cst = arith.constant dense<0.000000e+00> : vector<16xf32>
    %2 = vector.multi_reduction <add>, %1, %cst [1] : vector<16x32xf32> to vector<16xf32>
    %3 = vector.shape_cast %2 : vector<16xf32> to vector<16x1xf32>
    %cst_1 = arith.constant 3.200000e+01 : f32
    %4 = vector.broadcast %cst_1 : f32 to vector<16x1xf32>
    %5 = arith.divf %3, %4 : vector<16x1xf32>
    %6 = vector.broadcast %5 : vector<16x1xf32> to vector<16x32xf32>
    %7 = arith.subf %1, %6 : vector<16x32xf32>
    %8 = arith.mulf %7, %7 : vector<16x32xf32>
    %cst_2 = arith.constant dense<0.000000e+00> : vector<16xf32>
    %9 = vector.multi_reduction <add>, %8, %cst_2 [1] : vector<16x32xf32> to vector<16xf32>
    %10 = vector.shape_cast %9 : vector<16xf32> to vector<16x1xf32>
    %cst_3 = arith.constant 3.200000e+01 : f32
    %11 = vector.broadcast %cst_3 : f32 to vector<16x1xf32>
    %12 = arith.divf %10, %11 : vector<16x1xf32>
    %13 = vector.broadcast %5 : vector<16x1xf32> to vector<16x32xf32>
    %14 = arith.subf %1, %13 : vector<16x32xf32>
    %cst_4 = arith.constant 9.99999974E-6 : f32
    %15 = vector.broadcast %cst_4 : f32 to vector<16x1xf32>
    %16 = arith.addf %12, %15 : vector<16x1xf32>
    %17 = math.rsqrt %16 : vector<16x1xf32>
    %18 = vector.broadcast %17 : vector<16x1xf32> to vector<16x32xf32>
    %19 = arith.mulf %14, %18 : vector<16x32xf32>
    %c0_5 = arith.constant 0 : index
    %c0_6 = arith.constant 0 : index
    %20 = vector.load %arg2[%c0_5, %c0_6] : memref<1x32xf32, #tpu.memory_space<vmem>>, vector<1x32xf32>
    %21 = vector.broadcast %20 : vector<1x32xf32> to vector<16x32xf32>
    %22 = arith.mulf %19, %21 : vector<16x32xf32>
    %c0_7 = arith.constant 0 : index
    %c0_8 = arith.constant 0 : index
    %23 = vector.load %arg3[%c0_7, %c0_8] : memref<1x32xf32, #tpu.memory_space<vmem>>, vector<1x32xf32>
    %24 = vector.broadcast %23 : vector<1x32xf32> to vector<16x32xf32>
    %25 = arith.addf %22, %24 : vector<16x32xf32>
    %26 = arith.truncf %25 : vector<16x32xf32> to vector<16x32xbf16>
    %c0_9 = arith.constant 0 : index
    %c0_10 = arith.constant 0 : index
    %27 = vector.load %arg4[%c0_9, %c0_10] : memref<32x96xbf16, #tpu.memory_space<vmem>>, vector<32x96xbf16>
    %cst_11 = arith.constant dense<0.000000e+00> : vector<16x96xf32>
    %28 = tpu.matmul %26, %27, %cst_11 {dimension_numbers = #tpu.dot_dimension_numbers<[1], [0], [0], [1], [0, 0, 1, 1], [], []>} : vector<16x32xbf16>, vector<32x96xbf16>, vector<16x96xf32> -> vector<16x96xf32>
    %c0_12 = arith.constant 0 : index
    %c0_13 = arith.constant 0 : index
    %29 = vector.load %arg5[%c0_12, %c0_13] : memref<1x96xf32, #tpu.memory_space<vmem>>, vector<1x96xf32>
    %30 = vector.broadcast %29 : vector<1x96xf32> to vector<16x96xf32>
    %31 = arith.addf %28, %30 : vector<16x96xf32>
    %32 = arith.truncf %31 : vector<16x96xf32> to vector<16x96xbf16>
    %c0_14 = arith.constant 0 : index
    %c0_15 = arith.constant 0 : index
    %33 = vector.load %arg6[%c0_14, %c0_15] : memref<16x96xbf16, #tpu.memory_space<vmem>>, vector<16x96xbf16>
    tpu.vector_store %arg6[%c0_14, %c0_15], %32 {strides = array<i32>} : memref<16x96xbf16, #tpu.memory_space<vmem>>, vector<16x96xbf16>,
    return
  }
  func.func @transform_0(%arg0: i32) -> (i32, i32) {
    %c0_i32 = arith.constant 0 : i32
    %c0_i32_0 = arith.constant 0 : i32
    return %arg0, %c0_i32 : i32, i32
  }
  func.func @transform_1(%arg0: i32) -> (i32, i32) {
    %c0_i32 = arith.constant 0 : i32
    %c0_i32_0 = arith.constant 0 : i32
    %c0_i32_1 = arith.constant 0 : i32
    return %c0_i32, %c0_i32_0 : i32, i32
  }
  func.func @transform_2(%arg0: i32) -> (i32, i32) {
    %c0_i32 = arith.constant 0 : i32
    %c0_i32_0 = arith.constant 0 : i32
    %c0_i32_1 = arith.constant 0 : i32
    return %c0_i32, %c0_i32_0 : i32, i32
  }
  func.func @transform_3(%arg0: i32) -> (i32, i32) {
    %c0_i32 = arith.constant 0 : i32
    %c0_i32_0 = arith.constant 0 : i32
    %c0_i32_1 = arith.constant 0 : i32
    return %c0_i32, %c0_i32_0 : i32, i32
  }
  func.func @transform_4(%arg0: i32) -> (i32, i32) {
    %c0_i32 = arith.constant 0 : i32
    %c0_i32_0 = arith.constant 0 : i32
    %c0_i32_1 = arith.constant 0 : i32
    return %c0_i32, %c0_i32_0 : i32, i32
  }
  func.func @transform_5(%arg0: i32) -> (i32, i32) {
    %c0_i32 = arith.constant 0 : i32
    %c0_i32_0 = arith.constant 0 : i32
    return %arg0, %c0_i32 : i32, i32
  }
}

</mosaic_0001>

<bundles_post_ra>
// kernel: tpu_custom_call.1
= control target key start
LH: loop header
LB: loop body
LE: loop exit
PB: predicated region body
PF: predicated region fallthrough
CT: control target
= control target key end

     0   :  { %10 = vsyncpa [#allocation3], 0  ;;  %s370_s0 = inlined_call_operand.hbm [shape: bf16[16,32], index: 0, kind: input, shape index: {}]   ;;  %s371_s1 = inlined_call_operand.vmem [shape: f32[1,32], index: 1, kind: input, shape index: {}]   ;;  %s372_s2 = inlined_call_operand.vmem [shape: f32[1,32], index: 2, kind: input, shape index: {}]   ;;  %s373_s3 = inlined_call_operand.hbm [shape: bf16[32,96], index: 3, kind: input, shape index: {}]   ;;  %s374_s4 = inlined_call_operand.vmem [shape: f32[1,96], index: 4, kind: input, shape index: {}]   ;;  %s375_s5 = inlined_call_operand.hbm [shape: bf16[16,96], index: 5, kind: output, shape index: {}]  }
   0x1   :  { %11 = vsyncpa [#allocation6], 0 }
   0x2   :  { %12 = vsyncpa [#allocation4], 0  ;;  %s301_s18 = smov [#allocation2]  }
   0x3   :  { %s18_s19 = sshll.u32 %s301_s18, 4  ;;  %s19_s19 = int_to_ptr.vmem [resolvable:$true] %s18_s19 }
   0x4   :  { %s243_s20 = scalar_lea.vmem %s19_s19, 128  ;;  %p248_p1 = scmp.lt.s32.totalorder %s19_s19, %s19_s19 }
   0x5   :  { %p244_p0 = scmp.ne.s32.totalorder %s19_s19, %s243_s20  ;;  %p249_p2 = scmp.lt.s32.totalorder %s243_s20, %s243_s20 }
   0x7   :  { %p250_p3 = por %p249_p2, %p248_p1 }
   0x9   :  { %p251_p4 = pnand %p250_p3, %p244_p0 }
   0xb   :  { %254 = shalt.err (!%p251_p4)
}
   0xc   :  { %s302_s21 = smov 64   ;;  %s303_s22 = smov 4  }
   0xd   :  { %24 = dma.hbm_to_vmem [thread:$0]  %s370_s0, 128, %s19_s19, [#allocation3], %s302_s21, %s302_s21, %s303_s22  }
   0xe   :  { %s304_s25 = smov [#allocation5]  }
   0xf   :  { %s34_s26 = sshll.u32 %s304_s25, 4  ;;  %s35_s26 = int_to_ptr.vmem [resolvable:$true] %s34_s26 }
  0x10   :  { %s263_s27 = scalar_lea.vmem %s35_s26, 256  ;;  %p268_p6 = scmp.lt.s32.totalorder %s35_s26, %s35_s26 }
  0x11   :  { %p264_p5 = scmp.ne.s32.totalorder %s35_s26, %s263_s27  ;;  %p269_p7 = scmp.lt.s32.totalorder %s263_s27, %s263_s27 }
  0x13   :  { %p270_p8 = por %p269_p7, %p268_p6 }
  0x15   :  { %p271_p9 = pnand %p270_p8, %p264_p5 }
  0x17   :  { %274 = shalt.err (!%p271_p9)
}
  0x18   :  { %40 = dma.hbm_to_vmem [thread:$0]  %s373_s3, 256, %s35_s26, [#allocation6], %s302_s21, %s302_s21, %s303_s22  }
  0x19   :  { %295 = dma.done.wait [#allocation3], 128  }
  0x1a   :  { %296 = vsyncadd [#allocation3], 4294967168 }
  0x1b   :  { %297 = dma.done.wait [#allocation6], 256  }
  0x1c   :  { %298 = vsyncadd [#allocation6], 4294967040  ;;  %v208_v0 = vld [vmem:[#allocation2] sm:$0xff]   ;;  %vm54_vm0 = vcmask 261120   ;;  %v229_v15 = vld [vmem:[#allocation5 + $0x8] sm:$0xff]   ;;  %v305_v16 = vmov 0.0  }
  0x1d   :  { %v209_v1 = vunpack.c.l.bf16 %v208_v0  ;;  %v210_v2 = vunpack.c.h.bf16 %v208_v0  ;;  %214 = vmatprep.subr.bf16.mxu0 %v305_v16  ;;  %vm306_vm1 = vmmov 0   ;;  %v230_v17 = vld [vmem:[#allocation5] sm:$0xff]   ;;  %v197_v26 = vld [vmem:[%s371_s1] ss:$0 sm:$0xff]  ;;  %vm176_vm2 = vcmask 781312   ;;  %s307_s1 = smov [#allocation7]  }
  0x1e   :  { %218 = vmatprep.mubr.msk.bf16.mxu0 %vm306_vm1, %v305_v16  ;;  %215 = vmatpush3.bf16.msra.mxu0 %v229_v15  ;;  %v198_v30 = vld [vmem:[%s372_s2] ss:$0 sm:$0xff]  ;;  %s184_s9 = sshll.u32 %s307_s1, 4  ;;  %s185_s9 = int_to_ptr.vmem [resolvable:$true] %s184_s9 }
  0x1f   :  { %v55_v3 = vsel %vm54_vm0, %v209_v1, 0.0  ;;  %v58_v4 = vsel %vm54_vm0, %v210_v2, 0.0  ;;  %216 = vmatprep.subr.bf16.mxu0 %v305_v16  ;;  %v199_v35 = vld [vmem:[%s374_s4] ss:$0 sm:$0xff]  ;;  %s275_s2 = scalar_lea.vmem %s185_s9, 128  ;;  %p280_p11 = scmp.lt.s32.totalorder %s185_s9, %s185_s9 }
  0x20   :  { %56 = vadd.xlane.f32.xlu0 %v55_v3  ;;  %p276_p10 = scmp.ne.s32.totalorder %s185_s9, %s275_s2  ;;  %p281_p12 = scmp.lt.s32.totalorder %s275_s2, %s275_s2 }
  0x22   :  { %217 = vmatpush3.bf16.msra.mxu0 %v230_v17  ;;  %p282_p13 = por %p281_p12, %p280_p11 }
  0x24   :  { %59 = vadd.xlane.f32.xlu0 %v58_v4  ;;  %p283_p0 = pnand %p282_p13, %p276_p10 }
  0xa9   :  { %v57_v5 = vpop.xlane.xlu0 %56 }
  0xaa   :  { %v62_v6 = vmul.f32 0.03125, %v57_v5 }
  0xac   :  { %v64_v7 = vsub.f32 %v209_v1, %v62_v6 }
  0xad   :  { %v60_v8 = vpop.xlane.xlu0 %59 }
  0xae   :  { %v63_v9 = vmul.f32 0.03125, %v60_v8  ;;  %v66_v10 = vmul.f32 %v64_v7, %v64_v7 }
  0xb0   :  { %v65_v11 = vsub.f32 %v210_v2, %v63_v9  ;;  %v68_v12 = vsel %vm54_vm0, %v66_v10, 0.0 }
  0xb1   :  { %69 = vadd.xlane.f32.xlu1 %v68_v12 }
  0xb2   :  { %v67_v13 = vmul.f32 %v65_v11, %v65_v11 }
  0xb4   :  { %v71_v14 = vsel %vm54_vm0, %v67_v13, 0.0 }
  0xb5   :  { %72 = vadd.xlane.f32.xlu1 %v71_v14 }
 0x13a   :  { %v70_v18 = vpop.xlane.xlu1 %69 }
 0x13b   :  { %v74_v19 = vmul.f32 0.03125, %v70_v18 }
 0x13d   :  { %v76_v20 = vadd.f32 1e-05, %v74_v19 }
 0x13e   :  { %v73_v21 = vpop.xlane.xlu1 %72 }
 0x13f   :  { %231 = vrsqrt.f32 %v76_v20  ;;  %v75_v22 = vmul.f32 0.03125, %v73_v21 }
 0x141   :  { %v77_v23 = vadd.f32 1e-05, %v75_v22 }
 0x143   :  { %233 = vrsqrt.f32 %v77_v23 }
 0x14c   :  { %v232_v24 = vpop.eup %231 }
 0x14d   :  { %v80_v25 = vmul.f32 %v232_v24, %v64_v7 }
 0x14f   :  { %v89_v29 = vmul.f32 %v197_v26, %v80_v25 }
 0x150   :  { %v234_v27 = vpop.eup %233 }
 0x151   :  { %v81_v28 = vmul.f32 %v234_v27, %v65_v11  ;;  %v98_v32 = vadd.f32 %v198_v30, %v89_v29 }
 0x153   :  { %v90_v31 = vmul.f32 %v197_v26, %v81_v28 }
 0x155   :  { %v99_v33 = vadd.f32 %v198_v30, %v90_v31 }
 0x157   :  { %v100_v34 = vpack.c.bf16 %v99_v33, %v98_v32 }
 0x159   :  { %219 = vmatmul.mubr.msk.bf16.vlgmr.msra.gmra.mxu0 %vm54_vm0, %v100_v34 }
 0x219   :  { %v161_v36 = vpop.f32.mrf.mxu0 }
 0x21a   :  { %v162_v37 = vadd.f32 %v199_v35, %v161_v36 }
 0x21b   :  { %v220_v38 = vpop.f32.mrf.mxu0 }
 0x21c   :  { %v205_v39 = vpack.c.bf16 %v162_v37, %v162_v37 }
 0x21d   :  { %v164_v40 = vpop.f32.mrf.mxu0 }
 0x21e   :  { %v165_v41 = vadd.f32 %v199_v35, %v164_v40  ;;  %177 = vst.msk [vmem:[#allocation7] sm:$0xf] %vm176_vm2, %v205_v39 }
 0x21f   :  { %v221_v42 = vpop.f32.mrf.mxu0 }
 0x220   :  { %v206_v43 = vpack.c.bf16 %v165_v41, %v165_v41 }
 0x222   :  { %178 = vst.msk [vmem:[#allocation7 + $0x4] sm:$0xf] %vm176_vm2, %v206_v43 }
 0x223   :  { %286 = shalt.err (!%p283_p0)
}
 0x224   :  { %190 = dma.vmem_to_hbm [thread:$0]  %s185_s9, 128, %s375_s5, [#allocation4], %s302_s21, %s302_s21, %s303_s22  }
 0x225   :  { %299 = dma.done.wait [#allocation4], 128  }
 0x226   :  { %300 = vsyncadd [#allocation4], 4294967168 }
 0x227   :  { %194 = vsyncpa [#allocation3], 1 }
 0x228   :  { %195 = vsyncpa [#allocation6], 1 }
 0x229   :  { %196 = vsyncpa [#allocation4], 1 }

</bundles_post_ra>
